<compile_context>
chip_gen: v7x
topology: tpu7x:2x2x1
jax: 0.10.0
libtpu: 0.0.40
codegen_flags: <defaults>
</compile_context>

<pallas_src>
import functools

import jax
import jax.numpy as jnp
from jax import lax
from jax.experimental import pallas as pl
from jax.experimental.pallas import tpu as pltpu


def _vmem():
    # Whole (small) array resident in VMEM; no grid tiling needed at these sizes.
    return pl.BlockSpec(memory_space=pltpu.MemorySpace.VMEM)


def _relu(x):
    return jnp.maximum(x, 0.0)


def _dot(a, b):
    return jnp.dot(a, b, preferred_element_type=jnp.float32)


def _ru8(n):
    return ((n + 7) // 8) * 8


# Packed-parameter layout (all block-diagonal fusions already applied).
_PARAM_ORDER = (
    "w1", "b1", "w2", "b2", "w3", "b3", "w4", "b4", "w5", "b5",   # fused DeepSets
    "ws1", "bs1", "ws2", "bs2",                                    # MLP_s
    "wm1", "bm1", "wm2", "bm2",                                    # MLP_out
)


def _make_layout(hid_dim, out_dim, Cd, Co):
    """Row-offset layout of the packed (rows, width) parameter buffer.
    Every parameter starts on a sublane-tile (multiple-of-8) row."""
    h = hid_dim
    shapes = {
        "w1": (Cd + Co, 2 * h), "b1": (1, 2 * h),
        "w2": (2 * h, 2 * h),   "b2": (1, 2 * h),
        "w3": (2 * h, 4 * h),   "b3": (1, 4 * h),
        "w4": (4 * h, 2 * h),   "b4": (1, 2 * h),
        "w5": (2 * h, 2 * h),   "b5": (1, 2 * h),
        "ws1": (Cd, h),         "bs1": (1, h),
        "ws2": (h, h),          "bs2": (1, h),
        "wm1": (3 * h, h),      "bm1": (1, h),
        "wm2": (h, out_dim),    "bm2": (1, out_dim),
    }
    layout, off, max_c = {}, 0, 0
    for name in _PARAM_ORDER:
        r, c = shapes[name]
        layout[name] = (off, r, c)
        off += _ru8(r)
        max_c = max(max_c, c)
    width = ((max_c + 127) // 128) * 128   # lane-dense buffer width
    return layout, off, width


def pack_params(params, hid_dim, out_dim, input_dim, input_off):
    """Build block-diagonal fused DeepSet weights (off-diagonal blocks exactly
    zero, d in the low lane half, o in the high lane half — matching wm1's row
    ordering [0:h]=d, [h:2h]=o, [2h:3h]=star) and pack every parameter into one
    contiguous f32 buffer."""
    h, Cd, Co = hid_dim, input_dim, input_off
    z = lambda s: jnp.zeros(s, jnp.float32)
    f = {}
    f["w1"] = (z((Cd + Co, 2 * h))
               .at[0:Cd, 0:h].set(params["d_w1"])
               .at[Cd:Cd + Co, h:2 * h].set(params["o_w1"]))
    f["b1"] = jnp.concatenate([params["d_b1"], params["o_b1"]], axis=-1)
    f["w2"] = (z((2 * h, 2 * h))
               .at[0:h, 0:h].set(params["d_w2"])
               .at[h:2 * h, h:2 * h].set(params["o_w2"]))
    f["b2"] = jnp.concatenate([params["d_b2"], params["o_b2"]], axis=-1)
    f["w3"] = (z((2 * h, 4 * h))
               .at[0:h, 0:2 * h].set(params["d_w3"])
               .at[h:2 * h, 2 * h:4 * h].set(params["o_w3"]))
    f["b3"] = jnp.concatenate([params["d_b3"], params["o_b3"]], axis=-1)
    f["w4"] = (z((4 * h, 2 * h))
               .at[0:2 * h, 0:h].set(params["d_w4"])
               .at[2 * h:4 * h, h:2 * h].set(params["o_w4"]))
    f["b4"] = jnp.concatenate([params["d_b4"], params["o_b4"]], axis=-1)
    f["w5"] = (z((2 * h, 2 * h))
               .at[0:h, 0:h].set(params["d_w5"])
               .at[h:2 * h, h:2 * h].set(params["o_w5"]))
    f["b5"] = jnp.concatenate([params["d_b5"], params["o_b5"]], axis=-1)
    f["ws1"], f["bs1"] = params["s_w1"], params["s_b1"]
    f["ws2"], f["bs2"] = params["s_w2"], params["s_b2"]
    f["wm1"], f["bm1"] = params["m_w1"], params["m_b1"]
    f["wm2"], f["bm2"] = params["m_w2"], params["m_b2"]

    layout, rows, width = _make_layout(hid_dim, out_dim, Cd, Co)
    buf = jnp.zeros((rows, width), jnp.float32)
    for name in _PARAM_ORDER:
        off, r, c = layout[name]
        buf = buf.at[off:off + r, 0:c].set(f[name].astype(jnp.float32))
    return buf


def scalar_model_kernel(B, N, Nd, No, h, out_dim, layout,
                        xdo_ref, xs_ref, p_ref, out_ref):
    def par(name):
        off, r, c = layout[name]
        return p_ref[off:off + r, 0:c]        # static, sublane-aligned ref slice

    # ---- fused DeepSet_d / DeepSet_o (lane block-diagonal) ------------------
    # phi: 3 layers (ReLU, ReLU, linear); d lives in the low lane half, o high.
    t = _relu(_dot(xdo_ref[...], par("w1")) + par("b1"))     # (B*N, 2h), K = Cd+Co
    t = _relu(_dot(t, par("w2")) + par("b2"))                # (B*N, 2h)
    t = _dot(t, par("w3")) + par("b3")                       # (B*N, 4h) lane-dense 128
    # 'mean' pool over the set dim: free-view reshape (N is a multiple of 8 in
    # the demo) + sublane (XLU) reduce.
    t = t.reshape(B, N, 4 * h)
    if Nd == No:
        pooled = jnp.sum(t, axis=1) * (1.0 / Nd)             # (B, 4h)
    else:
        # Padded rows (zero-filled in the wrapper) are excluded per lane half.
        row = lax.broadcasted_iota(jnp.int32, (B, N, 4 * h), 1)
        lane = lax.broadcasted_iota(jnp.int32, (B, N, 4 * h), 2)
        valid = row < jnp.where(lane < 2 * h, Nd, No)
        pooled = jnp.sum(jnp.where(valid, t, 0.0), axis=1)
        lane2 = lax.broadcasted_iota(jnp.int32, (B, 4 * h), 1)
        pooled = pooled * jnp.where(lane2 < 2 * h, 1.0 / Nd, 1.0 / No)
    # rho: 2 layers, still block-diagonal.
    r = _relu(_dot(pooled, par("w4")) + par("b4"))           # (B, 2h)
    out_do = _dot(r, par("w5")) + par("b5")                  # (B, 2h) = [out_d | out_o]

    # ---- MLP_s on the 'star' scalars ----------------------------------------
    xs = xs_ref[...]
    if xs.shape[-1] == 1:
        s1 = _relu(xs * par("ws1") + par("bs1"))             # VPU broadcast (K == 1)
    else:
        s1 = _relu(_dot(xs, par("ws1")) + par("bs1"))
    out_s = _dot(s1, par("ws2")) + par("bs2")                # (B, h)

    # ---- MLP_out on concat([out_d, out_o, out_star], -1) --------------------
    # [out_d|out_o] is already lane-concatenated -> only 2 MXU passes, no concat.
    m_off, _, m_c = layout["wm1"]
    wm1_do = p_ref[m_off:m_off + 2 * h, 0:m_c]               # rows [0:2h]
    wm1_s = p_ref[m_off + 2 * h:m_off + 3 * h, 0:m_c]        # rows [2h:3h]
    z = _relu(_dot(out_do, wm1_do) + _dot(out_s, wm1_s) + par("bm1"))
    out_ref[...] = _dot(z, par("wm2")) + par("bm2")          # (B, out_dim)


def scalar_model_forward(f_d, f_o, f_star, packed_params, hid_dim, out_dim):
    """f_d: (B, N_d, input_dim), f_o: (B, N_o, input_off), f_star: (B, input_dim)
    -> (B, out_dim)."""
    B, Nd, Cd = f_d.shape
    _, No, Co = f_o.shape
    N = max(Nd, No)
    fd = f_d if Nd == N else jnp.pad(f_d, ((0, 0), (0, N - Nd), (0, 0)))
    fo = f_o if No == N else jnp.pad(f_o, ((0, 0), (0, N - No), (0, 0)))
    # Lane-concat of the two set inputs done in the wrapper (never in-kernel).
    xdo = jnp.concatenate([fd, fo], axis=-1).reshape(B * N, Cd + Co)

    layout, rows, width = _make_layout(hid_dim, out_dim, Cd, Co)
    assert packed_params.shape == (rows, width)

    kernel = functools.partial(scalar_model_kernel,
                               B, N, Nd, No, hid_dim, out_dim, layout)
    return pl.pallas_call(
        kernel,
        out_shape=jax.ShapeDtypeStruct((B, out_dim), jnp.float32),
        in_specs=[_vmem(), _vmem(), _vmem()],
        out_specs=_vmem(),
    )(xdo, f_star, packed_params)


def init_params(key, input_dim=1, input_off=1, hid_dim=32, out_dim=16):
    """PyTorch-Linear-like init (U[-1/sqrt(fan_in), 1/sqrt(fan_in)]).
    Weights stored as (fan_in, fan_out), i.e. already transposed vs torch."""
    set_ch = hid_dim * 2

    def linear(k, fin, fout):
        kw, kb = jax.random.split(k)
        bound = 1.0 / (fin ** 0.5)
        w = jax.random.uniform(kw, (fin, fout), jnp.float32, -bound, bound)
        b = jax.random.uniform(kb, (1, fout), jnp.float32, -bound, bound)
        return w, b

    keys = jax.random.split(key, 14)
    p = {}
    # DeepSet_d: phi input_dim->h->h->2h, mean pool, rho 2h->h->h
    p['d_w1'], p['d_b1'] = linear(keys[0], input_dim, hid_dim)
    p['d_w2'], p['d_b2'] = linear(keys[1], hid_dim, hid_dim)
    p['d_w3'], p['d_b3'] = linear(keys[2], hid_dim, set_ch)
    p['d_w4'], p['d_b4'] = linear(keys[3], set_ch, hid_dim)
    p['d_w5'], p['d_b5'] = linear(keys[4], hid_dim, hid_dim)
    # DeepSet_o: same shapes (input_off channels in), separate weights
    p['o_w1'], p['o_b1'] = linear(keys[5], input_off, hid_dim)
    p['o_w2'], p['o_b2'] = linear(keys[6], hid_dim, hid_dim)
    p['o_w3'], p['o_b3'] = linear(keys[7], hid_dim, set_ch)
    p['o_w4'], p['o_b4'] = linear(keys[8], set_ch, hid_dim)
    p['o_w5'], p['o_b5'] = linear(keys[9], hid_dim, hid_dim)
    # MLP_s: [input_dim, h, h]
    p['s_w1'], p['s_b1'] = linear(keys[10], input_dim, hid_dim)
    p['s_w2'], p['s_b2'] = linear(keys[11], hid_dim, hid_dim)
    # MLP_out: [3h, h, out_dim]
    p['m_w1'], p['m_b1'] = linear(keys[12], 3 * hid_dim, hid_dim)
    p['m_w2'], p['m_b2'] = linear(keys[13], hid_dim, out_dim)
    return p


if __name__ == "__main__":
    key = jax.random.PRNGKey(0)
    kd, ko, ks, kp = jax.random.split(key, 4)

    B, Nd, No = 2, 8, 8                 # batch of 2; 8 diag + 8 off-diag scalars per graph
    input_dim, input_off = 1, 1         # per the ScalarModel defaults
    hid_dim, out_dim = 32, 16

    f_d = jax.random.normal(kd, (B, Nd, input_dim), jnp.float32)
    f_o = jax.random.normal(ko, (B, No, input_off), jnp.float32)
    f_star = jax.random.normal(ks, (B, input_dim), jnp.float32)

    params = init_params(kp, input_dim, input_off, hid_dim, out_dim)
    packed = pack_params(params, hid_dim, out_dim, input_dim, input_off)

    out = scalar_model_forward(f_d, f_o, f_star, packed, hid_dim, out_dim)
    jax.block_until_ready(out)
    assert out.shape == (B, out_dim) and out.dtype == jnp.float32
    print("KERNEL_OK")
</pallas_src>

<mosaic_0001>
module attributes {stable_mosaic.version = 11 : i64} {
  func.func @scalar_model_kernel(%arg0: memref<16x2xf32, #tpu.memory_space<vmem>>, %arg1: memref<2x1xf32, #tpu.memory_space<vmem>>, %arg2: memref<568x128xf32, #tpu.memory_space<vmem>>, %arg3: memref<2x16xf32, #tpu.memory_space<vmem>>) attributes {dimension_semantics = [], scalar_prefetch = 0 : i64, scratch_operands = 0 : i64, tpu.core_type = #tpu.core_type<tc>} {
    %c0 = arith.constant 0 : index
    %c0_0 = arith.constant 0 : index
    %0 = vector.load %arg0[%c0, %c0_0] : memref<16x2xf32, #tpu.memory_space<vmem>>, vector<16x2xf32>
    %c0_1 = arith.constant 0 : index
    %c0_2 = arith.constant 0 : index
    %1 = vector.load %arg2[%c0_1, %c0_2] : memref<568x128xf32, #tpu.memory_space<vmem>>, vector<2x64xf32>
    %cst = arith.constant dense<0.000000e+00> : vector<16x64xf32>
    %2 = tpu.matmul %0, %1, %cst {dimension_numbers = #tpu.dot_dimension_numbers<[1], [0], [0], [1], [0, 0, 1, 1], [], []>} : vector<16x2xf32>, vector<2x64xf32>, vector<16x64xf32> -> vector<16x64xf32>
    %c8 = arith.constant 8 : index
    %c0_3 = arith.constant 0 : index
    %3 = vector.load %arg2[%c8, %c0_3] : memref<568x128xf32, #tpu.memory_space<vmem>>, vector<1x64xf32>
    %4 = vector.broadcast %3 : vector<1x64xf32> to vector<16x64xf32>
    %5 = arith.addf %2, %4 : vector<16x64xf32>
    %cst_4 = arith.constant 0.000000e+00 : f32
    %6 = vector.broadcast %cst_4 : f32 to vector<16x64xf32>
    %7 = arith.maximumf %5, %6 : vector<16x64xf32>
    %c16 = arith.constant 16 : index
    %c0_5 = arith.constant 0 : index
    %8 = vector.load %arg2[%c16, %c0_5] : memref<568x128xf32, #tpu.memory_space<vmem>>, vector<64x64xf32>
    %cst_6 = arith.constant dense<0.000000e+00> : vector<16x64xf32>
    %9 = tpu.matmul %7, %8, %cst_6 {dimension_numbers = #tpu.dot_dimension_numbers<[1], [0], [0], [1], [0, 0, 1, 1], [], []>} : vector<16x64xf32>, vector<64x64xf32>, vector<16x64xf32> -> vector<16x64xf32>
    %c80 = arith.constant 80 : index
    %c0_7 = arith.constant 0 : index
    %10 = vector.load %arg2[%c80, %c0_7] : memref<568x128xf32, #tpu.memory_space<vmem>>, vector<1x64xf32>
    %11 = vector.broadcast %10 : vector<1x64xf32> to vector<16x64xf32>
    %12 = arith.addf %9, %11 : vector<16x64xf32>
    %cst_8 = arith.constant 0.000000e+00 : f32
    %13 = vector.broadcast %cst_8 : f32 to vector<16x64xf32>
    %14 = arith.maximumf %12, %13 : vector<16x64xf32>
    %c88 = arith.constant 88 : index
    %c0_9 = arith.constant 0 : index
    %15 = vector.load %arg2[%c88, %c0_9] : memref<568x128xf32, #tpu.memory_space<vmem>>, vector<64x128xf32>
    %cst_10 = arith.constant dense<0.000000e+00> : vector<16x128xf32>
    %16 = tpu.matmul %14, %15, %cst_10 {dimension_numbers = #tpu.dot_dimension_numbers<[1], [0], [0], [1], [0, 0, 1, 1], [], []>} : vector<16x64xf32>, vector<64x128xf32>, vector<16x128xf32> -> vector<16x128xf32>
    %c152 = arith.constant 152 : index
    %c0_11 = arith.constant 0 : index
    %17 = vector.load %arg2[%c152, %c0_11] : memref<568x128xf32, #tpu.memory_space<vmem>>, vector<1x128xf32>
    %18 = vector.broadcast %17 : vector<1x128xf32> to vector<16x128xf32>
    %19 = arith.addf %16, %18 : vector<16x128xf32>
    %20 = vector.shape_cast %19 : vector<16x128xf32> to vector<2x8x128xf32>
    %cst_12 = arith.constant dense<0.000000e+00> : vector<2x128xf32>
    %21 = vector.multi_reduction <add>, %20, %cst_12 [1] : vector<2x8x128xf32> to vector<2x128xf32>
    %cst_13 = arith.constant 1.250000e-01 : f32
    %22 = vector.broadcast %cst_13 : f32 to vector<2x128xf32>
    %23 = arith.mulf %21, %22 : vector<2x128xf32>
    %c160 = arith.constant 160 : index
    %c0_14 = arith.constant 0 : index
    %24 = vector.load %arg2[%c160, %c0_14] : memref<568x128xf32, #tpu.memory_space<vmem>>, vector<128x64xf32>
    %cst_15 = arith.constant dense<0.000000e+00> : vector<2x64xf32>
    %25 = tpu.matmul %23, %24, %cst_15 {dimension_numbers = #tpu.dot_dimension_numbers<[1], [0], [0], [1], [0, 0, 1, 1], [], []>} : vector<2x128xf32>, vector<128x64xf32>, vector<2x64xf32> -> vector<2x64xf32>
    %c288 = arith.constant 288 : index
    %c0_16 = arith.constant 0 : index
    %26 = vector.load %arg2[%c288, %c0_16] : memref<568x128xf32, #tpu.memory_space<vmem>>, vector<1x64xf32>
    %27 = vector.broadcast %26 : vector<1x64xf32> to vector<2x64xf32>
    %28 = arith.addf %25, %27 : vector<2x64xf32>
    %cst_17 = arith.constant 0.000000e+00 : f32
    %29 = vector.broadcast %cst_17 : f32 to vector<2x64xf32>
    %30 = arith.maximumf %28, %29 : vector<2x64xf32>
    %c296 = arith.constant 296 : index
    %c0_18 = arith.constant 0 : index
    %31 = vector.load %arg2[%c296, %c0_18] : memref<568x128xf32, #tpu.memory_space<vmem>>, vector<64x64xf32>
    %cst_19 = arith.constant dense<0.000000e+00> : vector<2x64xf32>
    %32 = tpu.matmul %30, %31, %cst_19 {dimension_numbers = #tpu.dot_dimension_numbers<[1], [0], [0], [1], [0, 0, 1, 1], [], []>} : vector<2x64xf32>, vector<64x64xf32>, vector<2x64xf32> -> vector<2x64xf32>
    %c360 = arith.constant 360 : index
    %c0_20 = arith.constant 0 : index
    %33 = vector.load %arg2[%c360, %c0_20] : memref<568x128xf32, #tpu.memory_space<vmem>>, vector<1x64xf32>
    %34 = vector.broadcast %33 : vector<1x64xf32> to vector<2x64xf32>
    %35 = arith.addf %32, %34 : vector<2x64xf32>
    %c0_21 = arith.constant 0 : index
    %c0_22 = arith.constant 0 : index
    %36 = vector.load %arg1[%c0_21, %c0_22] : memref<2x1xf32, #tpu.memory_space<vmem>>, vector<2x1xf32>
    %c368 = arith.constant 368 : index
    %c0_23 = arith.constant 0 : index
    %37 = vector.load %arg2[%c368, %c0_23] : memref<568x128xf32, #tpu.memory_space<vmem>>, vector<1x32xf32>
    %38 = vector.broadcast %36 : vector<2x1xf32> to vector<2x32xf32>
    %39 = vector.broadcast %37 : vector<1x32xf32> to vector<2x32xf32>
    %40 = arith.mulf %38, %39 : vector<2x32xf32>
    %c376 = arith.constant 376 : index
    %c0_24 = arith.constant 0 : index
    %41 = vector.load %arg2[%c376, %c0_24] : memref<568x128xf32, #tpu.memory_space<vmem>>, vector<1x32xf32>
    %42 = vector.broadcast %41 : vector<1x32xf32> to vector<2x32xf32>
    %43 = arith.addf %40, %42 : vector<2x32xf32>
    %cst_25 = arith.constant 0.000000e+00 : f32
    %44 = vector.broadcast %cst_25 : f32 to vector<2x32xf32>
    %45 = arith.maximumf %43, %44 : vector<2x32xf32>
    %c384 = arith.constant 384 : index
    %c0_26 = arith.constant 0 : index
    %46 = vector.load %arg2[%c384, %c0_26] : memref<568x128xf32, #tpu.memory_space<vmem>>, vector<32x32xf32>
    %cst_27 = arith.constant dense<0.000000e+00> : vector<2x32xf32>
    %47 = tpu.matmul %45, %46, %cst_27 {dimension_numbers = #tpu.dot_dimension_numbers<[1], [0], [0], [1], [0, 0, 1, 1], [], []>} : vector<2x32xf32>, vector<32x32xf32>, vector<2x32xf32> -> vector<2x32xf32>
    %c416 = arith.constant 416 : index
    %c0_28 = arith.constant 0 : index
    %48 = vector.load %arg2[%c416, %c0_28] : memref<568x128xf32, #tpu.memory_space<vmem>>, vector<1x32xf32>
    %49 = vector.broadcast %48 : vector<1x32xf32> to vector<2x32xf32>
    %50 = arith.addf %47, %49 : vector<2x32xf32>
    %c424 = arith.constant 424 : index
    %c0_29 = arith.constant 0 : index
    %51 = vector.load %arg2[%c424, %c0_29] : memref<568x128xf32, #tpu.memory_space<vmem>>, vector<64x32xf32>
    %c488 = arith.constant 488 : index
    %c0_30 = arith.constant 0 : index
    %52 = vector.load %arg2[%c488, %c0_30] : memref<568x128xf32, #tpu.memory_space<vmem>>, vector<32x32xf32>
    %cst_31 = arith.constant dense<0.000000e+00> : vector<2x32xf32>
    %53 = tpu.matmul %35, %51, %cst_31 {dimension_numbers = #tpu.dot_dimension_numbers<[1], [0], [0], [1], [0, 0, 1, 1], [], []>} : vector<2x64xf32>, vector<64x32xf32>, vector<2x32xf32> -> vector<2x32xf32>
    %cst_32 = arith.constant dense<0.000000e+00> : vector<2x32xf32>
    %54 = tpu.matmul %50, %52, %cst_32 {dimension_numbers = #tpu.dot_dimension_numbers<[1], [0], [0], [1], [0, 0, 1, 1], [], []>} : vector<2x32xf32>, vector<32x32xf32>, vector<2x32xf32> -> vector<2x32xf32>
    %55 = arith.addf %53, %54 : vector<2x32xf32>
    %c520 = arith.constant 520 : index
    %c0_33 = arith.constant 0 : index
    %56 = vector.load %arg2[%c520, %c0_33] : memref<568x128xf32, #tpu.memory_space<vmem>>, vector<1x32xf32>
    %57 = vector.broadcast %56 : vector<1x32xf32> to vector<2x32xf32>
    %58 = arith.addf %55, %57 : vector<2x32xf32>
    %cst_34 = arith.constant 0.000000e+00 : f32
    %59 = vector.broadcast %cst_34 : f32 to vector<2x32xf32>
    %60 = arith.maximumf %58, %59 : vector<2x32xf32>
    %c528 = arith.constant 528 : index
    %c0_35 = arith.constant 0 : index
    %61 = vector.load %arg2[%c528, %c0_35] : memref<568x128xf32, #tpu.memory_space<vmem>>, vector<32x16xf32>
    %cst_36 = arith.constant dense<0.000000e+00> : vector<2x16xf32>
    %62 = tpu.matmul %60, %61, %cst_36 {dimension_numbers = #tpu.dot_dimension_numbers<[1], [0], [0], [1], [0, 0, 1, 1], [], []>} : vector<2x32xf32>, vector<32x16xf32>, vector<2x16xf32> -> vector<2x16xf32>
    %c560 = arith.constant 560 : index
    %c0_37 = arith.constant 0 : index
    %63 = vector.load %arg2[%c560, %c0_37] : memref<568x128xf32, #tpu.memory_space<vmem>>, vector<1x16xf32>
    %64 = vector.broadcast %63 : vector<1x16xf32> to vector<2x16xf32>
    %65 = arith.addf %62, %64 : vector<2x16xf32>
    %c0_38 = arith.constant 0 : index
    %c0_39 = arith.constant 0 : index
    %66 = vector.load %arg3[%c0_38, %c0_39] : memref<2x16xf32, #tpu.memory_space<vmem>>, vector<2x16xf32>
    tpu.vector_store %arg3[%c0_38, %c0_39], %65 {strides = array<i32>} : memref<2x16xf32, #tpu.memory_space<vmem>>, vector<2x16xf32>,
    return
  }
}

</mosaic_0001>

<bundles_post_ra>
// kernel: tpu_custom_call.1
= control target key start
LH: loop header
LB: loop body
LE: loop exit
PB: predicated region body
PF: predicated region fallthrough
CT: control target
= control target key end

     0   :  { %8 = vsyncpa [#allocation3], 0  ;;  %s1382_s0 = inlined_call_operand.vmem [shape: f32[16,2], index: 0, kind: input, shape index: {}]   ;;  %s1383_s1 = inlined_call_operand.vmem [shape: f32[2,1], index: 1, kind: input, shape index: {}]   ;;  %s1384_s2 = inlined_call_operand.hbm [shape: f32[568,128], index: 2, kind: input, shape index: {}]   ;;  %s1385_s3 = inlined_call_operand.hbm [shape: f32[2,16], index: 3, kind: output, shape index: {}]  }
   0x1   :  { %9 = vsyncpa [#allocation4], 0  ;;  %s1278_s12 = smov [#allocation2]   ;;  %s1230_s16 = scalar_lea.hbm %s1384_s2, 9088 }
   0x2   :  { %s19_s13 = sshll.u32 %s1278_s12, 4  ;;  %p1231_p0 = scmp.ne.s32.totalorder %s1384_s2, %s1230_s16  ;;  %s20_s13 = int_to_ptr.vmem [resolvable:$true] %s19_s13 }
   0x3   :  { %p1234_p1 = scmp.lt.u32.totalorder %s1230_s16, %s1384_s2 }
   0x5   :  { %p1236_p2 = pnand %p1234_p1, %p1231_p0 }
   0x7   :  { %1239 = shalt.err (!%p1236_p2)
}
   0x8   :  { %s1240_s21 = scalar_lea.vmem %s20_s13, 9088  ;;  %p1245_p4 = scmp.lt.s32.totalorder %s20_s13, %s20_s13 }
   0x9   :  { %p1241_p3 = scmp.ne.s32.totalorder %s20_s13, %s1240_s21  ;;  %p1246_p5 = scmp.lt.s32.totalorder %s1240_s21, %s1240_s21 }
   0xb   :  { %p1247_p6 = por %p1246_p5, %p1245_p4 }
   0xd   :  { %p1248_p7 = pnand %p1247_p6, %p1241_p3 }
   0xf   :  { %1251 = shalt.err (!%p1248_p7)
}
  0x10   :  { %s1279_s22 = smov 128   ;;  %s1280_s23 = smov 8  }
  0x11   :  { %25 = dma.hbm_to_vmem [thread:$0]  %s1384_s2, 9088, %s20_s13, [#allocation3], %s1279_s22, %s1279_s22, %s1280_s23  }
  0x12   :  { %1274 = dma.done.wait [#allocation3], 9088  }
  0x13   :  { %1275 = vsyncadd [#allocation3], 4294958208  ;;  %vm44_vm0 = vcmask 1041408   ;;  %vm37_vm1 = vcmask 15360   ;;  %v31_v0 = vld [vmem:[#allocation2] sm:$0x3] }
  0x14   :  { %v29_v1 = vld [vmem:[%s1382_s0] sm:$0xff]  ;;  %v30_v2 = vld [vmem:[%s1382_s0 + $0x8] sm:$0xff]  ;;  %974 = vmatprep.subr.msk.mxu0 %vm44_vm0, %v31_v0  ;;  %v125_v3 = vld [vmem:[#allocation2 + $0x10] sm:$0xff]  ;;  %vm138_vm2 = vcmask 523264   ;;  %v1281_v37 = vmov 0.0|0.0   ;;  %vm1282_vm3 = vmmov 0  }
  0x15   :  { %976 = vmatprep.mubr.msk.f32.mxu0 %vm37_vm1, %v29_v1  ;;  %v126_v4 = vld [vmem:[#allocation2 + $0x18] sm:$0xff]  ;;  %v127_v5 = vld [vmem:[#allocation2 + $0x20] sm:$0xff]  ;;  %975 = vmatpush3.msk.msra.mxu0 %vm44_vm0, %v31_v0  ;;  %v128_v7 = vld [vmem:[#allocation2 + $0x28] sm:$0xff]  ;;  %vm353_vm4 = vcmask 1041409   ;;  %vm541_vm5 = vcmask 261120   ;;  %vm862_vm6 = vcmask 123904  }
  0x16   :  { %v1123_v6 = vpack.c.bf16 %v126_v4, %v125_v3  ;;  %977 = vmatmul.mubr.msk.f32.vlgmr.msra.gmra.mrb[0].mxu0 %vm37_vm1, %v30_v2  ;;  %v1127_v8 = vpack.c.bf16 %v128_v7, %v127_v5  ;;  %v129_v9 = vld [vmem:[#allocation2 + $0x30] sm:$0xff]  ;;  %v130_v10 = vld [vmem:[#allocation2 + $0x38] sm:$0xff]  ;;  %v131_v12 = vld [vmem:[#allocation2 + $0x40] sm:$0xff]  ;;  %v1283_v2 = vmov 0.0  }
  0x17   :  { %v1131_v11 = vpack.c.bf16 %v130_v10, %v129_v9  ;;  %v132_v13 = vld [vmem:[#allocation2 + $0x48] sm:$0xff]  ;;  %v222_v15 = vld [vmem:[#allocation2 + $0x58] sm:$0xff]  ;;  %v223_v16 = vld [vmem:[#allocation2 + $0x60] sm:$0xff] }
  0x18   :  { %1124 = vmatprep.subr.bf16.mxu1 %v1123_v6  ;;  %v1135_v14 = vpack.c.bf16 %v132_v13, %v131_v12  ;;  %v224_v17 = vld [vmem:[#allocation2 + $0x68] sm:$0xff]  ;;  %v1139_v18 = vpack.c.bf16 %v223_v16, %v222_v15  ;;  %v225_v19 = vld [vmem:[#allocation2 + $0x70] sm:$0xff]  ;;  %v226_v21 = vld [vmem:[#allocation2 + $0x78] sm:$0xff] }
  0x19   :  { %1126 = vmatpush3.bf16.msra.mxu1 %v1123_v6  ;;  %v1143_v20 = vpack.c.bf16 %v225_v19, %v224_v17  ;;  %v227_v22 = vld [vmem:[#allocation2 + $0x80] sm:$0xff]  ;;  %v879_v24 = vld [vmem:[#allocation2 + $0x8] ss:$0 sm:$0xff]  ;;  %v229_v32 = vld [vmem:[#allocation2 + $0x90] sm:$0xff]  ;;  %v1284_v6 = vmov 0  }
  0x1a   :  { %1128 = vmatprep.subr.bf16.mxu1 %v1127_v8  ;;  %1140 = vmatprep.subr.bf16.mxu0 %v1139_v18  ;;  %v1147_v23 = vpack.c.bf16 %v227_v22, %v226_v21  ;;  %v228_v31 = vld [vmem:[#allocation2 + $0x88] sm:$0xff]  ;;  %v330_v34 = vld [vmem:[#allocation2 + $0xa0] sm:$0xff]  ;;  %v332_v36 = vld [vmem:[#allocation2 + $0xb0] sm:$0xff] }
  0x1b   :  { %1142 = vmatpush3.bf16.msra.mxu0 %v1139_v18  ;;  %v1151_v33 = vpack.c.bf16 %v229_v32, %v228_v31  ;;  %v331_v35 = vld [vmem:[#allocation2 + $0xa8] sm:$0xff]  ;;  %v333_v39 = vld [vmem:[#allocation2 + $0xb8] sm:$0xff]  ;;  %v334_v41 = vld [vmem:[#allocation2 + $0xc0] sm:$0xff]  ;;  %1229 = vset.pattern.permute.xlu0 %v1284_v6 }
  0x1c   :  { %1144 = vmatprep.subr.bf16.mxu0 %v1143_v20  ;;  %v1156_v38 = vpack.c.bf16 %v331_v35, %v330_v34  ;;  %v1159_v40 = vpack.c.bf16 %v333_v39, %v332_v36  ;;  %v335_v42 = vld [vmem:[#allocation2 + $0xc8] sm:$0xff]  ;;  %v883_v44 = vld [vmem:[#allocation2 + $0x50] ss:$0 sm:$0xff]  ;;  %v337_v52 = vld [vmem:[#allocation2 + $0xd8] sm:$0xff] }
  0x1d   :  { %1130 = vmatpush3.bf16.msra.mxu1 %v1127_v8  ;;  %v1162_v43 = vpack.c.bf16 %v335_v42, %v334_v41  ;;  %v336_v51 = vld [vmem:[#allocation2 + $0xd0] sm:$0xff]  ;;  %v338_v54 = vld [vmem:[#allocation2 + $0xe0] sm:$0xff]  ;;  %v339_v55 = vld [vmem:[#allocation2 + $0xe8] sm:$0xff] }
  0x1e   :  { %1132 = vmatprep.subr.bf16.mxu1 %v1131_v11  ;;  %v1165_v53 = vpack.c.bf16 %v337_v52, %v336_v51  ;;  %v1168_v56 = vpack.c.bf16 %v339_v55, %v338_v54  ;;  %v340_v57 = vld [vmem:[#allocation2 + $0xf0] sm:$0xff]  ;;  %v341_v58 = vld [vmem:[#allocation2 + $0xf8] sm:$0xff]  ;;  %v342_v60 = vld [vmem:[#allocation2 + $0x100] sm:$0xff] }
  0x1f   :  { %1146 = vmatpush3.bf16.msra.mxu0 %v1143_v20  ;;  %v1171_v59 = vpack.c.bf16 %v341_v58, %v340_v57  ;;  %v343_v61 = vld [vmem:[#allocation2 + $0x108] sm:$0xff]  ;;  %v344_v63 = vld [vmem:[#allocation2 + $0x110] sm:$0xff]  ;;  %v345_v0 = vld [vmem:[#allocation2 + $0x118] sm:$0xff] }
  0x20   :  { %1148 = vmatprep.subr.bf16.mxu0 %v1147_v23  ;;  %v1174_v62 = vpack.c.bf16 %v343_v61, %v342_v60  ;;  %v1177_v1 = vpack.c.bf16 %v345_v0, %v344_v63  ;;  %v513_v3 = vld [vmem:[%s1383_s1] sm:$0x3]  ;;  %v427_v4 = vld [vmem:[#allocation2 + $0x128] sm:$0xff]  ;;  %v428_v5 = vld [vmem:[#allocation2 + $0x130] sm:$0xff]  ;;  %s1285_s1 = smov [#allocation5]  }
  0x21   :  { %1134 = vmatpush3.bf16.msra.mxu1 %v1131_v11  ;;  %v1180_v7 = vpack.c.bf16 %v428_v5, %v427_v4  ;;  %v429_v8 = vld [vmem:[#allocation2 + $0x138] sm:$0xff]  ;;  %v430_v9 = vld [vmem:[#allocation2 + $0x140] sm:$0xff]  ;;  %517 = vperm.xlu0 %1229, %v513_v3   ;;  %v431_v11 = vld [vmem:[#allocation2 + $0x148] sm:$0xff]  ;;  %s870_s30 = sshll.u32 %s1285_s1, 4  ;;  %s871_s30 = int_to_ptr.vmem [resolvable:$true] %s870_s30 }
  0x22   :  { %1136 = vmatprep.subr.bf16.mxu1 %v1135_v14  ;;  %v1183_v10 = vpack.c.bf16 %v430_v9, %v429_v8  ;;  %v432_v12 = vld [vmem:[#allocation2 + $0x150] sm:$0xff]  ;;  %v433_v34 = vld [vmem:[#allocation2 + $0x158] sm:$0xff]  ;;  %v434_v35 = vld [vmem:[#allocation2 + $0x160] sm:$0xff]  ;;  %s1252_s4 = scalar_lea.vmem %s871_s30, 32  ;;  %p1257_p9 = scmp.lt.s32.totalorder %s871_s30, %s871_s30 }
  0x23   :  { %1150 = vmatpush3.bf16.msra.mxu0 %v1147_v23  ;;  %v1186_v13 = vpack.c.bf16 %v432_v12, %v431_v11  ;;  %v1189_v36 = vpack.c.bf16 %v434_v35, %v433_v34  ;;  %v616_v39 = vld [vmem:[#allocation2 + $0x1b0] sm:$0xff]  ;;  %v618_v42 = vld [vmem:[#allocation2 + $0x1c0] sm:$0xff]  ;;  %v533_v51 = vld [vmem:[#allocation2 + $0x188] sm:$0xff]  ;;  %p1253_p8 = scmp.ne.s32.totalorder %s871_s30, %s1252_s4  ;;  %p1258_p10 = scmp.lt.s32.totalorder %s1252_s4, %s1252_s4 }
  0x24   :  { %1152 = vmatprep.subr.bf16.mxu0 %v1151_v33  ;;  %v535_v60 = vld [vmem:[#allocation2 + $0x198] sm:$0xff]  ;;  %v623_v4 = vld [vmem:[#allocation2 + $0x1e8] sm:$0xff]  ;;  %v624_v5 = vld [vmem:[#allocation2 + $0x1f0] sm:$0xff] }
  0x25   :  { %1138 = vmatpush3.bf16.msra.mxu1 %v1135_v14  ;;  %v886_v14 = vld [vmem:[#allocation2 + $0x98] ss:$0 sm:$0xff]  ;;  %v1198_v6 = vpack.c.bf16 %v624_v5, %v623_v4  ;;  %v626_v8 = vld [vmem:[#allocation2 + $0x200] sm:$0xff]  ;;  %p1259_p11 = por %p1258_p10, %p1257_p9 }
  0x26   :  { %1155 = vmatprep.subr.bf16.mxu1 %v1281_v37  ;;  %v621_v0 = vld [vmem:[#allocation2 + $0x1d8] sm:$0xff] }
  0x27   :  { %1154 = vmatpush3.bf16.msra.mxu0 %v1151_v33  ;;  %p1260_p12 = pnand %p1259_p11, %p1253_p8 }
  0x28   :  { %1179 = vmatprep.subr.bf16.mxu0 %v1281_v37 }
  0xe9   :  { %v978_v25 = vpop.f32.mrb[0].mxu0 }
  0xea   :  { %v120_v26 = vadd.f32 %v978_v25, %v879_v24  ;;  %v114_v27 = vpop.f32.mrb[1].mxu0 }
  0xeb   :  { %v115_v28 = vadd.f32 %v879_v24, %v114_v27 }
  0xec   :  { %v124_v30 = vmax.f32 %v120_v26, 0.0 }
  0xed   :  { %v123_v29 = vmax.f32 %v115_v28, 0.0 }
  0xef   :  { %995 = vmatprep.mubr.msk.f32.mxu1 %vm138_vm2, %v123_v29 }
  0xf0   :  { %996 = vmatmul.mubr.msk.f32.vlgmr.msra.gmra.mrb[0].mxu1 %vm138_vm2, %v124_v30 }
  0xf1   :  { %1157 = vmatpush3.bf16.msra.mxu1 %v1156_v38  ;;  %1049 = vmatprep.mubr.msk.f32.mxu1 %vm1282_vm3, %v1283_v2  ;;  %v615_v38 = vld [vmem:[#allocation2 + $0x1a8] sm:$0xff] }
  0xf2   :  { %1158 = vmatprep.subr.bf16.mxu1 %v1281_v37  ;;  %v1204_v41 = vpack.c.bf16 %v616_v39, %v615_v38 }
  0xf5   :  { %1160 = vmatpush3.bf16.msra.mxu1 %v1159_v40  ;;  %v617_v40 = vld [vmem:[#allocation2 + $0x1b8] sm:$0xff] }
  0xf6   :  { %1161 = vmatprep.subr.bf16.mxu1 %v1281_v37 }
  0xf9   :  { %1163 = vmatpush3.bf16.msra.mxu1 %v1162_v43  ;;  %v1207_v43 = vpack.c.bf16 %v618_v42, %v617_v40 }
  0xfa   :  { %1164 = vmatprep.subr.bf16.mxu1 %v1281_v37 }
  0xfd   :  { %1166 = vmatpush3.bf16.msra.mxu1 %v1165_v53 }
  0xfe   :  { %1167 = vmatprep.subr.bf16.mxu1 %v1281_v37 }
 0x101   :  { %1169 = vmatpush3.bf16.msra.mxu1 %v1168_v56  ;;  %v893_v56 = vld [vmem:[#allocation2 + $0x178] ss:$0 sm:$0xff] }
 0x102   :  { %1170 = vmatprep.subr.bf16.mxu1 %v1281_v37 }
 0x105   :  { %1172 = vmatpush3.bf16.msra.mxu1 %v1171_v59  ;;  %v534_v59 = vld [vmem:[#allocation2 + $0x190] sm:$0xff] }
 0x106   :  { %1173 = vmatprep.subr.bf16.mxu1 %v1281_v37 }
 0x109   :  { %1175 = vmatpush3.bf16.msra.mxu1 %v1174_v62  ;;  %v1195_v62 = vpack.c.bf16 %v535_v60, %v534_v59 }
 0x10a   :  { %1176 = vmatprep.subr.bf16.mxu1 %v1281_v37 }
 0x10d   :  { %1178 = vmatpush3.bf16.msra.mxu1 %v1177_v1  ;;  %v622_v1 = vld [vmem:[#allocation2 + $0x1e0] sm:$0xff] }
 0x10e   :  { %1203 = vmatprep.subr.bf16.mxu1 %v1281_v37  ;;  %v1213_v3 = vpack.c.bf16 %v622_v1, %v621_v0 }
 0x1c3   :  { %v997_v45 = vpop.f32.mrb[0].mxu1 }
 0x1c4   :  { %v217_v46 = vadd.f32 %v997_v45, %v883_v44  ;;  %v211_v47 = vpop.f32.mrb[1].mxu1  ;;  %v620_v45 = vld [vmem:[#allocation2 + $0x1d0] sm:$0xff] }
 0x1c5   :  { %v212_v48 = vadd.f32 %v883_v44, %v211_v47  ;;  %v619_v44 = vld [vmem:[#allocation2 + $0x1c8] sm:$0xff]  ;;  %v889_v47 = vld [vmem:[#allocation2 + $0x120] ss:$0 sm:$0xff] }
 0x1c6   :  { %v221_v50 = vmax.f32 %v217_v46, 0.0  ;;  %v1210_v46 = vpack.c.bf16 %v620_v45, %v619_v44 }
 0x1c7   :  { %v220_v49 = vmax.f32 %v212_v48, 0.0  ;;  %v892_v48 = vld [vmem:[#allocation2 + $0x170] ss:$0 sm:$0xff] }
 0x1c9   :  { %1014 = vmatprep.mubr.msk.f32.mxu0 %vm138_vm2, %v220_v49  ;;  %v518_v49 = vpop.permute.xlu0 %517 }
 0x1ca   :  { %1015 = vmatmul.mubr.msk.f32.vlgmr.msra.gmra.mrb[2].mxu0 %vm138_vm2, %v221_v50  ;;  %v532_v50 = vld [vmem:[#allocation2 + $0x180] sm:$0xff]  ;;  %v524_v55 = vmul.f32 %v892_v48, %v518_v49 }
 0x1cb   :  { %1068 = vmatprep.mubr.msk.f32.mxu0 %vm1282_vm3, %v1283_v2  ;;  %1181 = vmatpush3.bf16.msra.mxu0 %v1180_v7  ;;  %v1192_v57 = vpack.c.bf16 %v533_v51, %v532_v50  ;;  %v625_v7 = vld [vmem:[#allocation2 + $0x1f8] sm:$0xff] }
 0x1cc   :  { %1182 = vmatprep.subr.bf16.mxu0 %v1281_v37  ;;  %v530_v61 = vadd.f32 %v893_v56, %v524_v55  ;;  %v1201_v9 = vpack.c.bf16 %v626_v8, %v625_v7 }
 0x1ce   :  { %v531_v63 = vmax.f32 %v530_v61, 0.0 }
 0x1cf   :  { %1184 = vmatpush3.bf16.msra.mxu0 %v1183_v10  ;;  %v890_v10 = vld [vmem:[#allocation2 + $0x168] ss:$0 sm:$0xff] }
 0x1d0   :  { %1185 = vmatprep.subr.bf16.mxu0 %v1281_v37 }
 0x1d3   :  { %1187 = vmatpush3.bf16.msra.mxu0 %v1186_v13 }
 0x1d4   :  { %1188 = vmatprep.subr.bf16.mxu0 %v1281_v37 }
 0x1d7   :  { %1190 = vmatpush3.bf16.msra.mxu0 %v1189_v36 }
 0x1d8   :  { %1191 = vmatprep.subr.bf16.mxu0 %v1281_v37 }
 0x29d   :  { %v1016_v15 = vpop.f32.mrb[2].mxu0 }
 0x29e   :  { %v313_v16 = vadd.f32 %v1016_v15, %v886_v14  ;;  %v307_v17 = vpop.f32.mrb[3].mxu0 }
 0x29f   :  { %v308_v18 = vadd.f32 %v886_v14, %v307_v17  ;;  %v894_v14 = vld [vmem:[#allocation2 + $0x1a0] ss:$0 sm:$0xff] }
 0x2a0   :  { %v322_v19 = vrot.slane %v313_v16, 4 }
 0x2a1   :  { %v316_v20 = vrot.slane %v308_v18, 4 }
 0x2a2   :  { %v323_v21 = vadd.f32 %v322_v19, %v313_v16  ;;  %v781_v19 = vld [vmem:[#allocation2 + $0x218] sm:$0xff] }
 0x2a3   :  { %v317_v22 = vadd.f32 %v316_v20, %v308_v18  ;;  %v780_v18 = vld [vmem:[#allocation2 + $0x210] sm:$0xff] }
 0x2a4   :  { %v324_v23 = vrot.slane %v323_v21, 2  ;;  %v1216_v20 = vpack.c.bf16 %v781_v19, %v780_v18 }
 0x2a5   :  { %v318_v24 = vrot.slane %v317_v22, 2 }
 0x2a6   :  { %v325_v25 = vadd.f32 %v324_v23, %v323_v21  ;;  %v782_v21 = vld [vmem:[#allocation2 + $0x220] sm:$0xff] }
 0x2a7   :  { %v319_v26 = vadd.f32 %v318_v24, %v317_v22  ;;  %v783_v22 = vld [vmem:[#allocation2 + $0x228] sm:$0xff] }
 0x2a8   :  { %v326_v27 = vrot.slane %v325_v25, 1  ;;  %v1219_v23 = vpack.c.bf16 %v783_v22, %v782_v21 }
 0x2a9   :  { %v320_v28 = vrot.slane %v319_v26, 1 }
 0x2aa   :  { %v327_v29 = vadd.f32 %v326_v27, %v325_v25  ;;  %v898_v27 = vld [vmem:[#allocation2 + $0x208] ss:$0 sm:$0xff] }
 0x2ab   :  { %v321_v30 = vadd.f32 %v320_v28, %v319_v26 }
 0x2ac   :  { %v329_v31 = vmul.f32 0.125, %v327_v29 }
 0x2ad   :  { %v328_v32 = vmul.f32 0.125, %v321_v30 }
 0x2af   :  { %v354_v33 = vsel %vm353_vm4, %v329_v31, %v328_v32 }
 0x2b0   :  { %1050 = vmatmul.mubr.f32.vlgmr.msra.gmra.mrb[2].mxu1 %v354_v33 }
 0x2b1   :  { %1109 = vmatprep.mubr.msk.f32.mxu1 %vm1282_vm3, %v1283_v2  ;;  %1205 = vmatpush3.bf16.msra.mxu1 %v1204_v41 }
 0x2b2   :  { %1206 = vmatprep.subr.bf16.mxu1 %v1281_v37 }
 0x2b5   :  { %1208 = vmatpush3.bf16.msra.mxu1 %v1207_v43 }
 0x2b6   :  { %1209 = vmatprep.subr.bf16.mxu1 %v1281_v37 }
 0x2b9   :  { %1211 = vmatpush3.bf16.msra.mxu1 %v1210_v46 }
 0x2ba   :  { %1212 = vmatprep.subr.bf16.mxu1 %v1281_v37 }
 0x2bd   :  { %1214 = vmatpush3.bf16.msra.mxu1 %v1213_v3 }
 0x383   :  { %v422_v52 = vpop.f32.mrb[2].mxu1 }
 0x384   :  { %v423_v53 = vadd.f32 %v889_v47, %v422_v52  ;;  %v1051_v54 = vpop.f32.mrb[3].mxu1 }
 0x386   :  { %v426_v58 = vmax.f32 %v423_v53, 0.0 }
 0x388   :  { %1069 = vmatmul.mubr.msk.f32.vlgmr.msra.gmra.mrb[4].mxu0 %vm138_vm2, %v426_v58 }
 0x389   :  { %1193 = vmatpush3.bf16.msra.mxu0 %v1192_v57  ;;  %1079 = vmatprep.mubr.msk.f32.mxu0 %vm1282_vm3, %v1283_v2 }
 0x38a   :  { %1194 = vmatprep.subr.bf16.mxu0 %v1281_v37 }
 0x38d   :  { %1196 = vmatpush3.bf16.msra.mxu0 %v1195_v62 }
 0x38e   :  { %1197 = vmatprep.subr.bf16.mxu0 %v1281_v37 }
 0x390   :  { %1080 = vmatmul.mubr.msk.f32.vlgmr.msra.gmra.mrb[6].mxu0 %vm541_vm5, %v531_v63 }
 0x391   :  { %1090 = vmatprep.mubr.msk.f32.mxu0 %vm1282_vm3, %v1283_v2  ;;  %1199 = vmatpush3.bf16.msra.mxu0 %v1198_v6 }
 0x392   :  { %1200 = vmatprep.subr.bf16.mxu0 %v1281_v37 }
 0x395   :  { %1202 = vmatpush3.bf16.msra.mxu0 %v1201_v9 }
 0x396   :  { %1215 = vmatprep.subr.bf16.mxu0 %v1281_v37 }
 0x45b   :  { %v509_v11 = vpop.f32.mrb[4].mxu0 }
 0x45c   :  { %v510_v12 = vadd.f32 %v890_v10, %v509_v11  ;;  %v1070_v13 = vpop.f32.mrb[5].mxu0 }
 0x45e   :  { %1110 = vmatmul.mubr.msk.f32.vlgmr.msra.gmra.mrb[4].mxu1 %vm138_vm2, %v510_v12 }
 0x463   :  { %v611_v15 = vpop.f32.mrb[6].mxu0 }
 0x464   :  { %v612_v16 = vadd.f32 %v894_v14, %v611_v15  ;;  %v1081_v17 = vpop.f32.mrb[7].mxu0 }
 0x466   :  { %1091 = vmatmul.mubr.msk.f32.vlgmr.msra.gmra.mrb[8].mxu0 %vm541_vm5, %v612_v16 }
 0x467   :  { %1120 = vmatprep.mubr.msk.f32.mxu0 %vm1282_vm3, %v1283_v2  ;;  %1217 = vmatpush3.bf16.msra.mxu0 %v1216_v20  ;;  %v899_v2 = vld [vmem:[#allocation2 + $0x230] ss:$0 sm:$0xff] }
 0x468   :  { %1218 = vmatprep.subr.bf16.mxu0 %v1281_v37 }
 0x46b   :  { %1220 = vmatpush3.bf16.msra.mxu0 %v1219_v23 }
 0x531   :  { %v769_v24 = vpop.f32.mrb[4].mxu1 }
 0x532   :  { %v1111_v25 = vpop.f32.mrb[5].mxu1 }
 0x539   :  { %v696_v26 = vpop.f32.mrb[8].mxu0 }
 0x53a   :  { %v770_v28 = vadd.f32 %v769_v24, %v696_v26  ;;  %v1092_v29 = vpop.f32.mrb[9].mxu0 }
 0x53c   :  { %v778_v30 = vadd.f32 %v898_v27, %v770_v28 }
 0x53e   :  { %v779_v31 = vmax.f32 %v778_v30, 0.0 }
 0x540   :  { %1121 = vmatmul.mubr.msk.f32.vlgmr.msra.gmra.mrb[10].mxu0 %vm541_vm5, %v779_v31 }
 0x613   :  { %v858_v32 = vpop.f32.mrb[10].mxu0 }
 0x614   :  { %v859_v37 = vadd.f32 %v899_v2, %v858_v32  ;;  %v1122_v33 = vpop.f32.mrb[11].mxu0 }
 0x616   :  { %863 = vst.msk [vmem:[#allocation5] sm:$0x3] %vm862_vm6, %v859_v37 }
 0x617   :  { %1263 = shalt.err (!%p1260_p12)
}
 0x618   :  { %s1264_s7 = scalar_lea.hbm %s1385_s3, 32 }
 0x619   :  { %p1265_p13 = scmp.ne.s32.totalorder %s1385_s3, %s1264_s7  ;;  %p1268_p0 = scmp.lt.u32.totalorder %s1264_s7, %s1385_s3 }
 0x61b   :  { %p1270_p1 = pnand %p1268_p0, %p1265_p13 }
 0x61d   :  { %1273 = shalt.err (!%p1270_p1)
}
 0x61e   :  { %873 = dma.vmem_to_hbm [thread:$0]  %s871_s30, 32, %s1385_s3, [#allocation4]  }
 0x61f   :  { %1276 = dma.done.wait [#allocation4], 32  }
 0x620   :  { %1277 = vsyncadd [#allocation4], 4294967264 }
 0x621   :  { %877 = vsyncpa [#allocation3], 1 }
 0x622   :  { %878 = vsyncpa [#allocation4], 1 }

</bundles_post_ra>
